<compile_context>
chip_gen: v5e
topology: v5e:2x2
jax: 0.10.0
libtpu: 0.0.40
codegen_flags: <defaults>
</compile_context>

<pallas_src>
import math

import jax
import jax.numpy as jnp
from jax.experimental import pallas as pl
from jax.experimental.pallas import tpu as pltpu

_LANE = 128


def make_pe_table(d_model: int, max_len: int = 5000) -> jnp.ndarray:
    """Bit-for-bit the same formula as the reference nn.Module __init__."""
    if d_model % 2 == 0:
        # Faithful to the reference: its construction only type-checks for odd d_model.
        # TODO(synk): generalize (or zero-pad) the table before adopting a lane-dense
        # d_model % 128 == 0 layout.
        raise ValueError("PositionalEncoding reference construction requires odd d_model")
    position = jnp.arange(0, max_len, dtype=jnp.float32)[:, None]          # (L, 1)
    div_term = jnp.exp(
        jnp.arange(0, d_model + 1, 2, dtype=jnp.float32)
        * (-math.log(10000.0) / d_model)
    )                                                                       # (d//2+1,)
    pe = jnp.zeros((max_len, d_model), dtype=jnp.float32)
    pe = pe.at[:, 0::2].set(jnp.sin(position * div_term[: d_model // 2 + 1]))
    pe = pe.at[:, 1::2].set(jnp.cos(position * div_term[: d_model // 2]))
    return pe


def _pe_add_kernel(x_ref, pe_ref, o_ref):
    # x_ref / o_ref: (TS, B, D) tile; pe_ref: (TS, D) matching pe rows.
    # Add in x's dtype: exact f32 math for f32 inputs (matches the reference),
    # native bf16 add for bf16 inputs (pe was pre-cast in the wrapper).
    x = x_ref[...]
    pe = pe_ref[...][:, None, :].astype(x.dtype)   # (TS, 1, D) -> broadcast over B
    o_ref[...] = (x + pe).astype(o_ref.dtype)


def _round_up(n: int, m: int) -> int:
    return (n + m - 1) // m * m


def _sublane(itemsize: int) -> int:
    # Native VMEM tile is (8, 128) 32-bit words; sub-32-bit dtypes pack along sublanes.
    return 8 * max(1, 4 // itemsize)


def _choose_seq_tile(seq_len: int, x_row_bytes: int, pe_row_bytes: int,
                     *, budget_bytes: int) -> int:
    """Sequence rows per grid step, sized from PADDED VMEM bytes.

    * Pipeline holds 2 buffers each of the x, out and pe blocks; keep that total
      under `budget_bytes` (12 MiB default fits v5e's 16 MiB scoped default with
      headroom and is tiny vs v7x's 64 MiB physical VMEM).
    * ts is a multiple of 8 so the (ts, D) pe block is sublane-legal against the
      full (max_len, D) table.
    * Long sequences get a few NEAR-EQUAL tiles (>= ~512 rows each) so the
      "parallel" axis load-balances v7x's 2 TensorCores; the extra ~0.35 us/step
      is negligible on single-TC v5e/v6e.
    """
    per_row = 2 * (2 * x_row_bytes + pe_row_bytes)
    ts = max(8, budget_bytes // max(1, per_row))
    ts = min(ts, _round_up(seq_len, 8))
    ts = max(8, (ts // 8) * 8)
    n = pl.cdiv(seq_len, ts)
    n = max(n, min(4, seq_len // 512))            # a few near-equal tiles when long
    ts = min(_round_up(pl.cdiv(seq_len, n), 8), _round_up(seq_len, 8))
    return int(ts)


def positional_encoding(x: jnp.ndarray, pe: jnp.ndarray, *,
                        donate_x: bool = False,
                        vmem_budget_bytes: int = 12 << 20) -> jnp.ndarray:
    """x: (S, B, D); pe: (max_len, D) f32 table. Returns x + pe[:S] broadcast over B."""
    S, B, D = x.shape
    max_len, d_pe = pe.shape
    assert D == d_pe, f"d_model mismatch: x has {D}, pe has {d_pe}"
    assert S <= max_len, f"sequence length {S} exceeds pe max_len {max_len}"

    # Pre-cast the (small) pe table when x is a narrower dtype (bf16): halves pe
    # DMA bytes and lets the add run natively in x's dtype.  f32 x keeps f32 pe.
    pe_in = pe if pe.dtype == x.dtype else pe.astype(x.dtype)

    x_it = x.dtype.itemsize
    pe_it = pe_in.dtype.itemsize
    # Padded VMEM bytes per sequence row: last two block dims round to (sublane, 128).
    x_row = _round_up(B, _sublane(x_it)) * _round_up(D, _LANE) * x_it
    pe_row = _round_up(D, _LANE) * pe_it

    ts = _choose_seq_tile(S, x_row, pe_row, budget_bytes=vmem_budget_bytes)
    grid = (pl.cdiv(S, ts),)

    # Explicit scoped-VMEM limit from the padded pipeline footprint, with headroom.
    x_blk = ts * x_row
    pe_blk = _round_up(ts, _sublane(pe_it)) * pe_row
    pipeline_bytes = 2 * (2 * x_blk + pe_blk)
    vmem_limit = min(max(pipeline_bytes + (4 << 20), 16 << 20), 32 << 20)

    call_kwargs = {}
    if donate_x:
        # Caller should also donate x at the jit boundary so XLA elides the copy.
        call_kwargs["input_output_aliases"] = {0: 0}

    return pl.pallas_call(
        _pe_add_kernel,
        out_shape=jax.ShapeDtypeStruct((S, B, D), x.dtype),
        grid=grid,
        in_specs=[
            # x tile: TS sequence rows, full (B, D) trailing extents (legal for any B/D).
            pl.BlockSpec((ts, B, D), lambda i: (i, 0, 0)),
            # Full pe table passed; this BlockSpec selects rows [i*ts, i*ts+ts)
            # directly (no wrapper-side pe[:S] slice, no resident full-S slab).
            pl.BlockSpec((ts, D), lambda i: (i, 0)),
        ],
        out_specs=pl.BlockSpec((ts, B, D), lambda i: (i, 0, 0)),
        compiler_params=pltpu.CompilerParams(
            dimension_semantics=("parallel",),
            vmem_limit_bytes=vmem_limit,
        ),
        **call_kwargs,
    )(x, pe_in)


if __name__ == "__main__":
    MAX_LEN = 64
    D = 33                      # odd d_model (required by the reference __init__)
    pe = make_pe_table(D, MAX_LEN)

    key = jax.random.PRNGKey(0)
    k1, k2, k3 = jax.random.split(key, 3)

    # Case 1: small shape consistent with the module's forward: (seq, batch, d_model).
    S1, B1 = 8, 4
    x1 = jax.random.normal(k1, (S1, B1, D), dtype=jnp.float32)
    out1 = jax.block_until_ready(positional_encoding(x1, pe))
    ref1 = x1 + pe[:S1][:, None, :]
    assert out1.shape == (S1, B1, D)
    assert jnp.allclose(out1, ref1, atol=1e-6, rtol=1e-6), "mismatch vs reference (case 1)"

    # Case 2: force a multi-step grid with a ragged last sequence tile via a tiny
    # VMEM budget (exercises the padded-aware tiler and edge masking).
    S2, B2 = 40, 4
    x2 = jax.random.normal(k2, (S2, B2, D), dtype=jnp.float32)
    out2 = jax.block_until_ready(positional_encoding(x2, pe, vmem_budget_bytes=300_000))
    ref2 = x2 + pe[:S2][:, None, :]
    assert out2.shape == (S2, B2, D)
    assert jnp.allclose(out2, ref2, atol=1e-6, rtol=1e-6), "mismatch vs reference (case 2)"

    # Case 3: bf16 fast path (pe pre-cast in the wrapper, native-dtype add).
    S3, B3 = 16, 4
    x3 = jax.random.normal(k3, (S3, B3, D), dtype=jnp.float32).astype(jnp.bfloat16)
    out3 = jax.block_until_ready(positional_encoding(x3, pe))
    ref3 = x3 + pe[:S3].astype(jnp.bfloat16)[:, None, :]
    assert out3.dtype == jnp.bfloat16
    assert jnp.allclose(out3.astype(jnp.float32), ref3.astype(jnp.float32),
                        atol=1e-2, rtol=1e-2), "mismatch vs reference (case 3)"

    print("KERNEL_OK")
</pallas_src>

<mosaic_0001>
module attributes {stable_mosaic.version = 11 : i64} {
  func.func @_pe_add_kernel(%arg0: i32, %arg1: memref<8x4x33xf32, #tpu.memory_space<vmem>>, %arg2: memref<8x33xf32, #tpu.memory_space<vmem>>, %arg3: memref<8x4x33xf32, #tpu.memory_space<vmem>>) attributes {dimension_semantics = [#tpu.dimension_semantics<parallel>], iteration_bounds = array<i64: 1>, scalar_prefetch = 0 : i64, scratch_operands = 0 : i64, tpu.core_type = #tpu.core_type<tc>, window_params = [{transform_indices = @transform_0, window_bounds = array<i64: 8, 4, 33>}, {transform_indices = @transform_1, window_bounds = array<i64: 8, 33>}, {transform_indices = @transform_2, window_bounds = array<i64: 8, 4, 33>}]} {
    %c0 = arith.constant 0 : index
    %c0_0 = arith.constant 0 : index
    %c0_1 = arith.constant 0 : index
    %0 = vector.load %arg1[%c0, %c0_0, %c0_1] : memref<8x4x33xf32, #tpu.memory_space<vmem>>, vector<8x4x33xf32>
    %c0_2 = arith.constant 0 : index
    %c0_3 = arith.constant 0 : index
    %1 = vector.load %arg2[%c0_2, %c0_3] : memref<8x33xf32, #tpu.memory_space<vmem>>, vector<8x33xf32>
    %2 = vector.shape_cast %1 : vector<8x33xf32> to vector<8x1x33xf32>
    %3 = vector.broadcast %2 : vector<8x1x33xf32> to vector<8x4x33xf32>
    %4 = arith.addf %0, %3 : vector<8x4x33xf32>
    %c0_4 = arith.constant 0 : index
    %c0_5 = arith.constant 0 : index
    %c0_6 = arith.constant 0 : index
    %5 = vector.load %arg3[%c0_4, %c0_5, %c0_6] : memref<8x4x33xf32, #tpu.memory_space<vmem>>, vector<8x4x33xf32>
    tpu.vector_store %arg3[%c0_4, %c0_5, %c0_6], %4 {strides = array<i32>} : memref<8x4x33xf32, #tpu.memory_space<vmem>>, vector<8x4x33xf32>,
    return
  }
  func.func @transform_0(%arg0: i32) -> (i32, i32, i32) {
    %c0_i32 = arith.constant 0 : i32
    %c0_i32_0 = arith.constant 0 : i32
    %c0_i32_1 = arith.constant 0 : i32
    return %arg0, %c0_i32, %c0_i32_0 : i32, i32, i32
  }
  func.func @transform_1(%arg0: i32) -> (i32, i32) {
    %c0_i32 = arith.constant 0 : i32
    %c0_i32_0 = arith.constant 0 : i32
    return %arg0, %c0_i32 : i32, i32
  }
  func.func @transform_2(%arg0: i32) -> (i32, i32, i32) {
    %c0_i32 = arith.constant 0 : i32
    %c0_i32_0 = arith.constant 0 : i32
    %c0_i32_1 = arith.constant 0 : i32
    return %arg0, %c0_i32, %c0_i32_0 : i32, i32, i32
  }
}

</mosaic_0001>

<bundles_post_ra>
// kernel: tpu_custom_call.1
= control target key start
LH: loop header
LB: loop body
LE: loop exit
PB: predicated region body
PF: predicated region fallthrough
CT: control target
= control target key end

     0   :  { %vm53_vm0 = vcmask 265216   ;;  %s165_s0 = inlined_call_operand.vmem [shape: f32[8,4,33], index: 0, kind: input, shape index: {}]   ;;  %s166_s1 = inlined_call_operand.vmem [shape: f32[64,33], index: 1, kind: input, shape index: {}]   ;;  %s167_s2 = inlined_call_operand.hbm [shape: f32[8,4,33], index: 2, kind: output, shape index: {}]  }
   0x1   :  { %v12_v0 = vld [vmem:[%s165_s0] sm:$0xf]  ;;  %v13_v2 = vld [vmem:[%s165_s0 + $0x4] sm:$0xf]  ;;  %v14_v5 = vld [vmem:[%s165_s0 + $0x8] sm:$0xf] }
   0x2   :  { %v20_v1 = vld [vmem:[%s166_s1] sm:$0xff]  ;;  %v15_v8 = vld [vmem:[%s165_s0 + $0xc] sm:$0xf]  ;;  %v16_v9 = vld [vmem:[%s165_s0 + $0x10] sm:$0xf] }
   0x3   :  { %v29_v3 = vperm.slane %v20_v1, 0  ;;  %v22_v4 = vrot.slane %v20_v1, 1  ;;  %v23_v6 = vrot.slane %v20_v1, 2  ;;  %v24_v7 = vrot.slane %v20_v1, 3  ;;  %v17_v16 = vld [vmem:[%s165_s0 + $0x14] sm:$0xf] }
   0x4   :  { %v25_v10 = vrot.slane %v20_v1, 4  ;;  %v26_v11 = vrot.slane %v20_v1, 5  ;;  %v27_v19 = vrot.slane %v20_v1, 6  ;;  %v28_v20 = vrot.slane %v20_v1, 7  ;;  %v18_v24 = vld [vmem:[%s165_s0 + $0x18] sm:$0xf] }
   0x5   :  { %v45_v12 = vadd.f32 %v29_v3, %v12_v0  ;;  %v30_v13 = vperm.slane %v22_v4, 0  ;;  %v31_v14 = vperm.slane %v23_v6, 0  ;;  %v32_v15 = vperm.slane %v24_v7, 0 }
   0x6   :  { %v33_v17 = vperm.slane %v25_v10, 0  ;;  %v34_v18 = vperm.slane %v26_v11, 0 }
   0x7   :  { %54 = vst.msk [vmem:[#allocation2] sm:$0xf] %vm53_vm0, %v45_v12  ;;  %v46_v21 = vadd.f32 %v30_v13, %v13_v2  ;;  %v47_v22 = vadd.f32 %v31_v14, %v14_v5  ;;  %v48_v23 = vadd.f32 %v32_v15, %v15_v8 }
   0x8   :  { %7 = vsyncpa [#allocation3], 0  ;;  %v49_v25 = vadd.f32 %v33_v17, %v16_v9  ;;  %v35_v26 = vperm.slane %v27_v19, 0  ;;  %v19_v27 = vld [vmem:[%s165_s0 + $0x1c] sm:$0xf]  ;;  %v36_v28 = vperm.slane %v28_v20, 0  ;;  %v50_v29 = vadd.f32 %v34_v18, %v17_v16 }
   0x9   :  { %55 = vst.msk [vmem:[#allocation2 + $0x4] sm:$0xf] %vm53_vm0, %v46_v21  ;;  %s109_s26 = smov [#allocation2]   ;;  %s68_s30 = sshll.u32 %s167_s2, 4  ;;  %s69_s30 = int_to_ptr.hbm [resolvable:$true] %s68_s30 }
   0xa   :  { %s66_s27 = sshll.u32 %s109_s26, 4  ;;  %56 = vst.msk [vmem:[#allocation2 + $0x8] sm:$0xf] %vm53_vm0, %v47_v22  ;;  %v51_v30 = vadd.f32 %v35_v26, %v18_v24  ;;  %v52_v31 = vadd.f32 %v36_v28, %v19_v27  ;;  %s110_s0 = smov 64   ;;  %s67_s27 = int_to_ptr.vmem [resolvable:$true] %s66_s27 }
   0xb   :  { %57 = vst.msk [vmem:[#allocation2 + $0xc] sm:$0xf] %vm53_vm0, %v48_v23  ;;  %s111_s3 = smov 4  }
   0xc   :  { %58 = vst.msk [vmem:[#allocation2 + $0x10] sm:$0xf] %vm53_vm0, %v49_v25 }
   0xd   :  { %59 = vst.msk [vmem:[#allocation2 + $0x14] sm:$0xf] %vm53_vm0, %v50_v29 }
   0xe   :  { %60 = vst.msk [vmem:[#allocation2 + $0x18] sm:$0xf] %vm53_vm0, %v51_v30 }
   0xf   :  { %61 = vst.msk [vmem:[#allocation2 + $0x1c] sm:$0xf] %vm53_vm0, %v52_v31 }
  0x10   :  { %74 = dma.vmem_to_hbm [thread:$0]  %s67_s27, 512, %s69_s30, [#allocation3], %s110_s0, %s110_s0, %s111_s3  }
  0x11   :  { %107 = dma.done.wait [#allocation3], 512  }
  0x12   :  { %108 = vsyncadd [#allocation3], 4294966784 }
  0x13   :  { %79 = vsyncpa [#allocation3], 1 }

</bundles_post_ra>
